<compile_context>
chip_gen: v7x
topology: tpu7x:2x2x1
jax: 0.10.0
libtpu: 0.0.40
codegen_flags: <defaults>
</compile_context>

<pallas_src>
import functools
import math

import numpy as np
import jax
import jax.numpy as jnp
from jax.experimental import pallas as pl
from jax.experimental.pallas import tpu as pltpu


def _num_tensorcores() -> int:
    """TensorCores per chip (2 on v7x, 1 on v5e/v6e). Defaults safely to 1."""
    try:
        info = pltpu.get_tpu_info()
        for attr in ("num_cores", "tensorcore_count", "num_tensorcores",
                     "core_count", "cores_per_chip"):
            n = getattr(info, attr, None)
            if isinstance(n, int) and n > 0:
                return n
    except Exception:
        pass
    try:
        kind = str(getattr(jax.devices()[0], "device_kind", "")).lower()
        if "v7" in kind:
            return 2
    except Exception:
        pass
    return 1


def _attn_kernel(x_ref, wqkv_ref, bqkv_ref, wo_ref, bo_ref, hm_ref, o_ref, *,
                 num_heads):
    # x_ref block: (BG, L, C) — BG batches handled by this program.
    BG, L, C = x_ref.shape
    H = num_heads
    seg = wqkv_ref.shape[1] // 3          # 128-lane-aligned q/k/v segment width

    # ---- fused QKV projection over the whole block (one f32 MXU matmul) ----
    x2 = x_ref[...].reshape(BG * L, C)                                  # (M, C)
    qkv = jnp.dot(x2, wqkv_ref[...],
                  preferred_element_type=jnp.float32) + bqkv_ref[...]   # (M, 3*seg)

    # vreg-aligned static slices (segments start at lane multiples of 128).
    # The 1/sqrt(Dh) scale is already folded into Wq/bq offline.
    q = qkv[:, 0:C].reshape(BG, L, C)
    k = qkv[:, seg:seg + C].reshape(BG, L, C)
    v = qkv[:, 2 * seg:2 * seg + C].reshape(BG, L, C)

    hm = hm_ref[...]                                                    # (H, C)

    # All heads' scores in one batched matmul: mask q per head (zeroed channels
    # contribute nothing to the contraction), contract over all C channels.
    qm = (q[:, None, :, :] * hm[None, :, None, :]).reshape(BG, H * L, C)
    s = jnp.einsum("bqc,bkc->bqk", qm, k,
                   preferred_element_type=jnp.float32)                  # (BG, H*L, L)

    # Softmax over the key axis — exact, f32 throughout.
    s_max = jnp.max(s, axis=-1, keepdims=True)
    p = jnp.exp(s - s_max)
    p = p / jnp.sum(p, axis=-1, keepdims=True)

    # All heads' PV in one batched matmul, then pick each head's own channels
    # and merge (masks are disjoint, so the sum over H is the head concat).
    o_full = jnp.einsum("bqk,bkc->bqc", p, v,
                        preferred_element_type=jnp.float32)             # (BG, H*L, C)
    attn = jnp.sum(o_full.reshape(BG, H, L, C) * hm[None, :, None, :],
                   axis=1)                                              # (BG, L, C)

    # ---- output projection over the whole block -----------------------------
    out = jnp.dot(attn.reshape(BG * L, C), wo_ref[...],
                  preferred_element_type=jnp.float32) + bo_ref[...]
    o_ref[...] = out.reshape(BG, L, C).astype(o_ref.dtype)


def pack_params(params, num_heads):
    """One-time parameter packing (call once outside the hot path)."""
    wq, wk, wv, wo = params["wq"], params["wk"], params["wv"], params["wo"]
    bq, bk, bv, bo = params["bq"], params["bk"], params["bv"], params["bo"]
    C = wq.shape[0]
    H = num_heads
    dh = C // H
    scale = 1.0 / math.sqrt(dh)

    # Fold the attention scale into Wq / bq (offline weight pre-scaling).
    wq_s = (wq * scale).astype(jnp.float32)
    bq_s = (bq * scale).astype(jnp.float32)

    # Pad each q/k/v segment to a 128-lane boundary so the in-kernel slices
    # start on vreg boundaries.  Padded columns are zero and never read.
    seg = ((C + 127) // 128) * 128
    wqkv = jnp.zeros((C, 3 * seg), jnp.float32)
    wqkv = wqkv.at[:, 0:C].set(wq_s.T)
    wqkv = wqkv.at[:, seg:seg + C].set(wk.T.astype(jnp.float32))
    wqkv = wqkv.at[:, 2 * seg:2 * seg + C].set(wv.T.astype(jnp.float32))
    bqkv = jnp.zeros((1, 3 * seg), jnp.float32)
    bqkv = bqkv.at[:, 0:C].set(bq_s)
    bqkv = bqkv.at[:, seg:seg + C].set(bk.astype(jnp.float32))
    bqkv = bqkv.at[:, 2 * seg:2 * seg + C].set(bv.astype(jnp.float32))

    wo_t = wo.T.astype(jnp.float32)                                     # (C, C)
    bo_r = bo.reshape(1, -1).astype(jnp.float32)                        # (1, C)

    # Trace-time head-selection mask: head_mask[h, c] = 1 iff channel c ∈ head h.
    head_mask = jnp.asarray(
        np.kron(np.eye(H, dtype=np.float32), np.ones((1, dh), np.float32)))
    return wqkv, bqkv, wo_t, bo_r, head_mask


def temporal_self_attention(x, packed_params, num_heads):
    """x: (B, L, C) float32.  packed_params: output of pack_params()."""
    wqkv, bqkv, wo_t, bo, head_mask = packed_params
    B, L, C = x.shape
    assert C % num_heads == 0, "embed_dim must be divisible by num_heads"
    seg3 = wqkv.shape[1]

    # One program per TensorCore when the batch divides evenly; otherwise a
    # single program (no pointless extra serial grid steps on 1-TC chips).
    # TODO(synk): for production-sized B, widen the grid (grid=(B // BG,)) so
    # per-block x DMAs pipeline; irrelevant at these toy sizes.
    num_cores = _num_tensorcores()
    G = num_cores if (num_cores > 1 and B % num_cores == 0) else 1
    BG = B // G

    kernel = functools.partial(_attn_kernel, num_heads=num_heads)

    return pl.pallas_call(
        kernel,
        out_shape=jax.ShapeDtypeStruct((B, L, C), x.dtype),
        grid_spec=pltpu.PrefetchScalarGridSpec(
            num_scalar_prefetch=0,
            grid=(G,),
            in_specs=[
                pl.BlockSpec((BG, L, C), lambda g: (g, 0, 0)),        # x block
                pl.BlockSpec((C, seg3), lambda g: (0, 0)),            # fused Wqkv^T
                pl.BlockSpec((1, seg3), lambda g: (0, 0)),            # fused bqkv
                pl.BlockSpec((C, C), lambda g: (0, 0)),               # Wo^T
                pl.BlockSpec((1, C), lambda g: (0, 0)),               # bo
                pl.BlockSpec((num_heads, C), lambda g: (0, 0)),       # head mask
            ],
            out_specs=pl.BlockSpec((BG, L, C), lambda g: (g, 0, 0)),
        ),
        compiler_params=pltpu.CompilerParams(
            dimension_semantics=("parallel",)),
    )(x, wqkv, bqkv, wo_t, bo, head_mask)


def _reference(x, params, num_heads):
    B, L, C = x.shape
    dh = C // num_heads
    q = x @ params["wq"].T + params["bq"]
    k = x @ params["wk"].T + params["bk"]
    v = x @ params["wv"].T + params["bv"]

    def split(t):  # (B, L, C) -> (B, H, L, dh)
        return t.reshape(B, L, num_heads, dh).transpose(0, 2, 1, 3)

    qh, kh, vh = split(q), split(k), split(v)
    s = jnp.einsum("bhld,bhmd->bhlm", qh, kh) / math.sqrt(dh)
    p = jax.nn.softmax(s, axis=-1)
    o = jnp.einsum("bhlm,bhmd->bhld", p, vh)
    o = o.transpose(0, 2, 1, 3).reshape(B, L, C)
    return o @ params["wo"].T + params["bo"]


if __name__ == "__main__":
    embed_dim = 32
    num_heads = 4
    num_frames = 8
    B = 2

    key = jax.random.PRNGKey(0)
    keys = jax.random.split(key, 9)
    scale = 1.0 / math.sqrt(embed_dim)
    params = {
        "wq": jax.random.uniform(keys[0], (embed_dim, embed_dim), jnp.float32, -scale, scale),
        "wk": jax.random.uniform(keys[1], (embed_dim, embed_dim), jnp.float32, -scale, scale),
        "wv": jax.random.uniform(keys[2], (embed_dim, embed_dim), jnp.float32, -scale, scale),
        "wo": jax.random.uniform(keys[3], (embed_dim, embed_dim), jnp.float32, -scale, scale),
        "bq": jax.random.uniform(keys[4], (embed_dim,), jnp.float32, -scale, scale),
        "bk": jax.random.uniform(keys[5], (embed_dim,), jnp.float32, -scale, scale),
        "bv": jax.random.uniform(keys[6], (embed_dim,), jnp.float32, -scale, scale),
        "bo": jax.random.uniform(keys[7], (embed_dim,), jnp.float32, -scale, scale),
    }
    x = jax.random.normal(keys[8], (B, num_frames, embed_dim), jnp.float32)

    # One-time weight packing (outside the per-call path).
    packed = pack_params(params, num_heads)
    packed = jax.tree_util.tree_map(jax.block_until_ready, packed)

    out = temporal_self_attention(x, packed, num_heads)
    out = jax.block_until_ready(out)

    ref = _reference(x, params, num_heads)
    assert out.shape == (B, num_frames, embed_dim)
    max_err = float(jnp.max(jnp.abs(out - ref)))
    # f32 matmuls + exact softmax division => near-f32 parity with the reference.
    assert jnp.allclose(out, ref, rtol=1e-2, atol=1e-2), \
        f"mismatch vs reference (max abs err {max_err:.3e})"

    print("KERNEL_OK")
</pallas_src>

<mosaic_0001>
module attributes {stable_mosaic.version = 11 : i64} {
  func.func @_attn_kernel(%arg0: i32, %arg1: memref<2x8x32xf32, #tpu.memory_space<vmem>>, %arg2: memref<32x384xf32, #tpu.memory_space<vmem>>, %arg3: memref<1x384xf32, #tpu.memory_space<vmem>>, %arg4: memref<32x32xf32, #tpu.memory_space<vmem>>, %arg5: memref<1x32xf32, #tpu.memory_space<vmem>>, %arg6: memref<4x32xf32, #tpu.memory_space<vmem>>, %arg7: memref<2x8x32xf32, #tpu.memory_space<vmem>>) attributes {dimension_semantics = [#tpu.dimension_semantics<parallel>], iteration_bounds = array<i64: 1>, scalar_prefetch = 0 : i64, scratch_operands = 0 : i64, tpu.core_type = #tpu.core_type<tc>, window_params = [{transform_indices = @transform_0, window_bounds = array<i64: 2, 8, 32>}, {pipeline_mode = #tpu.pipeline_mode<synchronous>, transform_indices = @transform_1, window_bounds = array<i64: 32, 384>}, {pipeline_mode = #tpu.pipeline_mode<synchronous>, transform_indices = @transform_2, window_bounds = array<i64: 1, 384>}, {pipeline_mode = #tpu.pipeline_mode<synchronous>, transform_indices = @transform_3, window_bounds = array<i64: 32, 32>}, {pipeline_mode = #tpu.pipeline_mode<synchronous>, transform_indices = @transform_4, window_bounds = array<i64: 1, 32>}, {pipeline_mode = #tpu.pipeline_mode<synchronous>, transform_indices = @transform_5, window_bounds = array<i64: 4, 32>}, {transform_indices = @transform_6, window_bounds = array<i64: 2, 8, 32>}]} {
    %c0 = arith.constant 0 : index
    %c0_0 = arith.constant 0 : index
    %c0_1 = arith.constant 0 : index
    %0 = vector.load %arg1[%c0, %c0_0, %c0_1] : memref<2x8x32xf32, #tpu.memory_space<vmem>>, vector<2x8x32xf32>
    %1 = vector.shape_cast %0 : vector<2x8x32xf32> to vector<16x32xf32>
    %c0_2 = arith.constant 0 : index
    %c0_3 = arith.constant 0 : index
    %2 = vector.load %arg2[%c0_2, %c0_3] : memref<32x384xf32, #tpu.memory_space<vmem>>, vector<32x384xf32>
    %cst = arith.constant dense<0.000000e+00> : vector<16x384xf32>
    %3 = tpu.matmul %1, %2, %cst {dimension_numbers = #tpu.dot_dimension_numbers<[1], [0], [0], [1], [0, 0, 1, 1], [], []>} : vector<16x32xf32>, vector<32x384xf32>, vector<16x384xf32> -> vector<16x384xf32>
    %c0_4 = arith.constant 0 : index
    %c0_5 = arith.constant 0 : index
    %4 = vector.load %arg3[%c0_4, %c0_5] : memref<1x384xf32, #tpu.memory_space<vmem>>, vector<1x384xf32>
    %5 = vector.broadcast %4 : vector<1x384xf32> to vector<16x384xf32>
    %6 = arith.addf %3, %5 : vector<16x384xf32>
    %7 = vector.extract_strided_slice %6 {offsets = [0, 0], sizes = [16, 32], strides = [1, 1]} : vector<16x384xf32> to vector<16x32xf32>
    %8 = vector.shape_cast %7 : vector<16x32xf32> to vector<2x8x32xf32>
    %9 = vector.extract_strided_slice %6 {offsets = [0, 128], sizes = [16, 32], strides = [1, 1]} : vector<16x384xf32> to vector<16x32xf32>
    %10 = vector.shape_cast %9 : vector<16x32xf32> to vector<2x8x32xf32>
    %11 = vector.extract_strided_slice %6 {offsets = [0, 256], sizes = [16, 32], strides = [1, 1]} : vector<16x384xf32> to vector<16x32xf32>
    %12 = vector.shape_cast %11 : vector<16x32xf32> to vector<2x8x32xf32>
    %c0_6 = arith.constant 0 : index
    %c0_7 = arith.constant 0 : index
    %13 = vector.load %arg6[%c0_6, %c0_7] : memref<4x32xf32, #tpu.memory_space<vmem>>, vector<4x32xf32>
    %14 = vector.shape_cast %8 : vector<2x8x32xf32> to vector<2x1x8x32xf32>
    %15 = vector.shape_cast %13 : vector<4x32xf32> to vector<1x4x1x32xf32>
    %16 = vector.broadcast %14 : vector<2x1x8x32xf32> to vector<2x4x8x32xf32>
    %17 = vector.broadcast %15 : vector<1x4x1x32xf32> to vector<2x4x8x32xf32>
    %18 = arith.mulf %16, %17 : vector<2x4x8x32xf32>
    %19 = vector.shape_cast %18 : vector<2x4x8x32xf32> to vector<2x32x32xf32>
    "tpu.trace_start"() <{level = 10 : i32, message = "bqc,bkc->bqk"}> : () -> ()
    %cst_8 = arith.constant dense<0.000000e+00> : vector<2x32x8xf32>
    %20 = tpu.matmul %19, %10, %cst_8 {dimension_numbers = #tpu.dot_dimension_numbers<[2], [2], [1], [1], [0, 0, 0, 1, 1, 1], [0], [0]>} : vector<2x32x32xf32>, vector<2x8x32xf32>, vector<2x32x8xf32> -> vector<2x32x8xf32>
    "tpu.trace_stop"() : () -> ()
    %cst_9 = arith.constant dense<0xFF800000> : vector<2x32xf32>
    %21 = vector.multi_reduction <maximumf>, %20, %cst_9 [2] : vector<2x32x8xf32> to vector<2x32xf32>
    %22 = vector.shape_cast %21 : vector<2x32xf32> to vector<2x32x1xf32>
    %23 = vector.broadcast %22 : vector<2x32x1xf32> to vector<2x32x8xf32>
    %24 = arith.subf %20, %23 : vector<2x32x8xf32>
    %25 = math.exp %24 : vector<2x32x8xf32>
    %cst_10 = arith.constant dense<0.000000e+00> : vector<2x32xf32>
    %26 = vector.multi_reduction <add>, %25, %cst_10 [2] : vector<2x32x8xf32> to vector<2x32xf32>
    %27 = vector.shape_cast %26 : vector<2x32xf32> to vector<2x32x1xf32>
    %28 = vector.broadcast %27 : vector<2x32x1xf32> to vector<2x32x8xf32>
    %29 = arith.divf %25, %28 : vector<2x32x8xf32>
    "tpu.trace_start"() <{level = 10 : i32, message = "bqk,bkc->bqc"}> : () -> ()
    %cst_11 = arith.constant dense<0.000000e+00> : vector<2x32x32xf32>
    %30 = tpu.matmul %29, %12, %cst_11 {dimension_numbers = #tpu.dot_dimension_numbers<[2], [1], [1], [2], [0, 0, 0, 1, 1, 2], [0], [0]>} : vector<2x32x8xf32>, vector<2x8x32xf32>, vector<2x32x32xf32> -> vector<2x32x32xf32>
    "tpu.trace_stop"() : () -> ()
    %31 = vector.shape_cast %30 : vector<2x32x32xf32> to vector<2x4x8x32xf32>
    %32 = vector.shape_cast %13 : vector<4x32xf32> to vector<1x4x1x32xf32>
    %33 = vector.broadcast %32 : vector<1x4x1x32xf32> to vector<2x4x8x32xf32>
    %34 = arith.mulf %31, %33 : vector<2x4x8x32xf32>
    %cst_12 = arith.constant dense<0.000000e+00> : vector<2x8x32xf32>
    %35 = vector.multi_reduction <add>, %34, %cst_12 [1] : vector<2x4x8x32xf32> to vector<2x8x32xf32>
    %36 = vector.shape_cast %35 : vector<2x8x32xf32> to vector<16x32xf32>
    %c0_13 = arith.constant 0 : index
    %c0_14 = arith.constant 0 : index
    %37 = vector.load %arg4[%c0_13, %c0_14] : memref<32x32xf32, #tpu.memory_space<vmem>>, vector<32x32xf32>
    %cst_15 = arith.constant dense<0.000000e+00> : vector<16x32xf32>
    %38 = tpu.matmul %36, %37, %cst_15 {dimension_numbers = #tpu.dot_dimension_numbers<[1], [0], [0], [1], [0, 0, 1, 1], [], []>} : vector<16x32xf32>, vector<32x32xf32>, vector<16x32xf32> -> vector<16x32xf32>
    %c0_16 = arith.constant 0 : index
    %c0_17 = arith.constant 0 : index
    %39 = vector.load %arg5[%c0_16, %c0_17] : memref<1x32xf32, #tpu.memory_space<vmem>>, vector<1x32xf32>
    %40 = vector.broadcast %39 : vector<1x32xf32> to vector<16x32xf32>
    %41 = arith.addf %38, %40 : vector<16x32xf32>
    %42 = vector.shape_cast %41 : vector<16x32xf32> to vector<2x8x32xf32>
    %c0_18 = arith.constant 0 : index
    %c0_19 = arith.constant 0 : index
    %c0_20 = arith.constant 0 : index
    %43 = vector.load %arg7[%c0_18, %c0_19, %c0_20] : memref<2x8x32xf32, #tpu.memory_space<vmem>>, vector<2x8x32xf32>
    tpu.vector_store %arg7[%c0_18, %c0_19, %c0_20], %42 {strides = array<i32>} : memref<2x8x32xf32, #tpu.memory_space<vmem>>, vector<2x8x32xf32>,
    return
  }
  func.func @transform_0(%arg0: i32) -> (i32, i32, i32) {
    %c0_i32 = arith.constant 0 : i32
    %c0_i32_0 = arith.constant 0 : i32
    %c0_i32_1 = arith.constant 0 : i32
    return %arg0, %c0_i32, %c0_i32_0 : i32, i32, i32
  }
  func.func @transform_1(%arg0: i32) -> (i32, i32) {
    %c0_i32 = arith.constant 0 : i32
    %c0_i32_0 = arith.constant 0 : i32
    %c0_i32_1 = arith.constant 0 : i32
    return %c0_i32, %c0_i32_0 : i32, i32
  }
  func.func @transform_2(%arg0: i32) -> (i32, i32) {
    %c0_i32 = arith.constant 0 : i32
    %c0_i32_0 = arith.constant 0 : i32
    %c0_i32_1 = arith.constant 0 : i32
    return %c0_i32, %c0_i32_0 : i32, i32
  }
  func.func @transform_3(%arg0: i32) -> (i32, i32) {
    %c0_i32 = arith.constant 0 : i32
    %c0_i32_0 = arith.constant 0 : i32
    %c0_i32_1 = arith.constant 0 : i32
    return %c0_i32, %c0_i32_0 : i32, i32
  }
  func.func @transform_4(%arg0: i32) -> (i32, i32) {
    %c0_i32 = arith.constant 0 : i32
    %c0_i32_0 = arith.constant 0 : i32
    %c0_i32_1 = arith.constant 0 : i32
    return %c0_i32, %c0_i32_0 : i32, i32
  }
  func.func @transform_5(%arg0: i32) -> (i32, i32) {
    %c0_i32 = arith.constant 0 : i32
    %c0_i32_0 = arith.constant 0 : i32
    %c0_i32_1 = arith.constant 0 : i32
    return %c0_i32, %c0_i32_0 : i32, i32
  }
  func.func @transform_6(%arg0: i32) -> (i32, i32, i32) {
    %c0_i32 = arith.constant 0 : i32
    %c0_i32_0 = arith.constant 0 : i32
    %c0_i32_1 = arith.constant 0 : i32
    return %arg0, %c0_i32, %c0_i32_0 : i32, i32, i32
  }
}

</mosaic_0001>

<bundles_post_ra>
// kernel: tpu_custom_call.1
= control target key start
LH: loop header
LB: loop body
LE: loop exit
PB: predicated region body
PF: predicated region fallthrough
CT: control target
= control target key end

     0   :  { %11 = vsyncpa [#allocation3], 0  ;;  %s1385_s0 = inlined_call_operand.hbm [shape: f32[2,8,32], index: 0, kind: input, shape index: {}]   ;;  %s1386_s1 = inlined_call_operand.hbm [shape: f32[32,384], index: 1, kind: input, shape index: {}]   ;;  %s1387_s2 = inlined_call_operand.vmem [shape: f32[1,384], index: 2, kind: input, shape index: {}]   ;;  %s1388_s3 = inlined_call_operand.hbm [shape: f32[32,32], index: 3, kind: input, shape index: {}]   ;;  %s1389_s4 = inlined_call_operand.vmem [shape: f32[1,32], index: 4, kind: input, shape index: {}]   ;;  %s1390_s5 = inlined_call_operand.vmem [shape: f32[4,32], index: 5, kind: input, shape index: {}]   ;;  %s1391_s6 = inlined_call_operand.hbm [shape: f32[2,8,32], index: 6, kind: output, shape index: {}]  }
   0x1   :  { %12 = vsyncpa [#allocation6], 0 }
   0x2   :  { %13 = vsyncpa [#allocation4], 0  ;;  %s1198_s21 = smov [#allocation5]   ;;  %s1104_s25 = scalar_lea.hbm %s1386_s1, 1536 }
   0x3   :  { %s31_s22 = sshll.u32 %s1198_s21, 4  ;;  %p1105_p0 = scmp.ne.s32.totalorder %s1386_s1, %s1104_s25  ;;  %s32_s22 = int_to_ptr.vmem [resolvable:$true] %s31_s22 }
   0x4   :  { %p1108_p1 = scmp.lt.u32.totalorder %s1104_s25, %s1386_s1 }
   0x6   :  { %p1110_p2 = pnand %p1108_p1, %p1105_p0 }
   0x8   :  { %1113 = shalt.err (!%p1110_p2)
}
   0x9   :  { %s1114_s30 = scalar_lea.vmem %s32_s22, 1536  ;;  %p1119_p4 = scmp.lt.s32.totalorder %s32_s22, %s32_s22 }
   0xa   :  { %p1115_p3 = scmp.ne.s32.totalorder %s32_s22, %s1114_s30  ;;  %p1120_p5 = scmp.lt.s32.totalorder %s1114_s30, %s1114_s30 }
   0xc   :  { %p1121_p6 = por %p1120_p5, %p1119_p4 }
   0xe   :  { %p1122_p7 = pnand %p1121_p6, %p1115_p3 }
  0x10   :  { %1125 = shalt.err (!%p1122_p7)
}
  0x11   :  { %s1199_s7 = smov 384   ;;  %s1200_s8 = smov 24  }
  0x12   :  { %37 = dma.hbm_to_vmem [thread:$0]  %s1386_s1, 1536, %s32_s22, [#allocation6], %s1199_s7, %s1199_s7, %s1200_s8  }
  0x13   :  { %s1201_s11 = smov [#allocation2]   ;;  %s1126_s15 = scalar_lea.hbm %s1385_s0, 256 }
  0x14   :  { %s19_s12 = sshll.u32 %s1201_s11, 4  ;;  %p1127_p8 = scmp.ne.s32.totalorder %s1385_s0, %s1126_s15  ;;  %s20_s12 = int_to_ptr.vmem [resolvable:$true] %s19_s12 }
  0x15   :  { %p1130_p9 = scmp.lt.u32.totalorder %s1126_s15, %s1385_s0 }
  0x17   :  { %p1132_p10 = pnand %p1130_p9, %p1127_p8 }
  0x19   :  { %1135 = shalt.err (!%p1132_p10)
}
  0x1a   :  { %s1136_s20 = scalar_lea.vmem %s20_s12, 256  ;;  %p1141_p12 = scmp.lt.s32.totalorder %s20_s12, %s20_s12 }
  0x1b   :  { %p1137_p11 = scmp.ne.s32.totalorder %s20_s12, %s1136_s20  ;;  %p1142_p13 = scmp.lt.s32.totalorder %s1136_s20, %s1136_s20 }
  0x1d   :  { %p1143_p0 = por %p1142_p13, %p1141_p12 }
  0x1f   :  { %p1144_p1 = pnand %p1143_p0, %p1137_p11 }
  0x21   :  { %1147 = shalt.err (!%p1144_p1)
}
  0x22   :  { %s1202_s1 = smov 128   ;;  %s1203_s21 = smov 8  }
  0x23   :  { %25 = dma.hbm_to_vmem [thread:$0]  %s1385_s0, 256, %s20_s12, [#allocation3], %s1202_s1, %s1202_s1, %s1203_s21  }
  0x24   :  { %s1204_s24 = smov [#allocation7]   ;;  %s1148_s28 = scalar_lea.hbm %s1388_s3, 512 }
  0x25   :  { %s45_s25 = sshll.u32 %s1204_s24, 4  ;;  %p1149_p2 = scmp.ne.s32.totalorder %s1388_s3, %s1148_s28  ;;  %s46_s25 = int_to_ptr.vmem [resolvable:$true] %s45_s25 }
  0x26   :  { %p1152_p3 = scmp.lt.u32.totalorder %s1148_s28, %s1388_s3 }
  0x28   :  { %p1154_p4 = pnand %p1152_p3, %p1149_p2 }
  0x2a   :  { %1157 = shalt.err (!%p1154_p4)
}
  0x2b   :  { %s1158_s9 = scalar_lea.vmem %s46_s25, 512  ;;  %p1163_p6 = scmp.lt.s32.totalorder %s46_s25, %s46_s25 }
  0x2c   :  { %p1159_p5 = scmp.ne.s32.totalorder %s46_s25, %s1158_s9  ;;  %p1164_p7 = scmp.lt.s32.totalorder %s1158_s9, %s1158_s9 }
  0x2e   :  { %p1165_p8 = por %p1164_p7, %p1163_p6 }
  0x30   :  { %p1166_p9 = pnand %p1165_p8, %p1159_p5 }
  0x32   :  { %1169 = shalt.err (!%p1166_p9)
}
  0x33   :  { %51 = dma.hbm_to_vmem [thread:$0]  %s1388_s3, 512, %s46_s25, [#allocation6], %s1202_s1, %s1202_s1, %s1203_s21  }
  0x34   :  { %1192 = dma.done.wait [#allocation3], 256  }
  0x35   :  { %1193 = vsyncadd [#allocation3], 4294967040 }
  0x36   :  { %1194 = dma.done.wait [#allocation6], 2048  }
  0x37   :  { %1195 = vsyncadd [#allocation6], 4294965248  ;;  %v1205_v0 = vmov 0.0   ;;  %v68_v1 = vld [vmem:[#allocation5 + $0x8] sm:$0xff]  ;;  %v71_v2 = vld [vmem:[#allocation5 + $0x20] sm:$0xff]  ;;  %vm96_vm0 = vcmask 261120   ;;  %v81_v21 = vlaneseq }
  0x38   :  { %167 = vmatprep.mubr.f32.mxu0 %v1205_v0  ;;  %v67_v3 = vld [vmem:[#allocation5] sm:$0xff]  ;;  %v1038_v4 = vpack.c.bf16 %v71_v2, %v68_v1  ;;  %v70_v5 = vld [vmem:[#allocation5 + $0x18] sm:$0xff]  ;;  %v77_v7 = vld [vmem:[#allocation5 + $0x50] sm:$0xff]  ;;  %v1206_v22 = vmov 1966171168   ;;  %vm509_vm1 = vcmask 64512  }
  0x39   :  { %v74_v6 = vld [vmem:[#allocation5 + $0x38] sm:$0xff]  ;;  %v1040_v8 = vpack.c.bf16 %v70_v5, %v67_v3  ;;  %v73_v10 = vld [vmem:[#allocation5 + $0x30] sm:$0xff]  ;;  %v76_v11 = vld [vmem:[#allocation5 + $0x48] sm:$0xff]  ;;  %v266_v23 = vunpack.c.l.s4 %v1206_v22  ;;  %v82_v24 = vshrl.u32 %v81_v21, 7  ;;  %s1207_s14 = smov [#allocation8]  }
  0x3a   :  { %v1042_v9 = vpack.c.bf16 %v77_v7, %v74_v6  ;;  %v65_v12 = vld [vmem:[#allocation2] sm:$0xff]  ;;  %1039 = vmatprep.subr.bf16.mxu0 %v1038_v4  ;;  %v72_v14 = vld [vmem:[#allocation5 + $0x28] sm:$0xff]  ;;  %v1044_v15 = vpack.c.bf16 %v76_v11, %v73_v10  ;;  %v75_v17 = vld [vmem:[#allocation5 + $0x40] sm:$0xff]  ;;  %s913_s15 = sshll.u32 %s1207_s14, 4  ;;  %s914_s15 = int_to_ptr.vmem [resolvable:$true] %s913_s15 }
  0x3b   :  { %v69_v13 = vld [vmem:[#allocation5 + $0x10] sm:$0xff]  ;;  %992 = vmatprep.mubr.msk.f32.mxu1 %vm96_vm0, %v65_v12  ;;  %1041 = vmatpush1.bf16.msra.mxu0 %v1040_v8  ;;  %v78_v18 = vld [vmem:[#allocation5 + $0x58] sm:$0xff]  ;;  %v267_v25 = vunpack.c.0.s8 %v266_v23  ;;  %v83_v28 = vsub.s32 0, %v82_v24  ;;  %v87_v31 = vsub.s32 1, %v82_v24  ;;  %v91_v34 = vsub.s32 2, %v82_v24  ;;  %s1170_s16 = scalar_lea.vmem %s914_s15, 256  ;;  %p1175_p11 = scmp.lt.s32.totalorder %s914_s15, %s914_s15 }
  0x3c   :  { %v1046_v16 = vpack.c.bf16 %v72_v14, %v69_v13  ;;  %1043 = vmatprep.subr.bf16.mxu0 %v1042_v9  ;;  %v1050_v19 = vpack.c.bf16 %v78_v18, %v75_v17  ;;  %v66_v20 = vld [vmem:[#allocation2 + $0x8] sm:$0xff]  ;;  %v930_v26 = vld.sshfl [vmem:[%s1390_s5] sm:$0x33 pattern:$0x75316420]  ;;  %p1171_p10 = scmp.ne.s32.totalorder %s914_s15, %s1170_s16  ;;  %p1176_p12 = scmp.lt.s32.totalorder %s1170_s16, %s1170_s16 }
  0x3d   :  { %v270_v27 = vsub.s32 %v267_v25, %v82_v24  ;;  %v79_v29 = vld [vmem:[%s1387_s2] sm:$0x7]  ;;  %v264_v30 = vcombine.high %v930_v26, %v930_v26 }
  0x3e   :  { %1047 = vmatprep.subr.bf16.mxu1 %v1046_v16  ;;  %v84_v33 = vrot.slane %v79_v29, %v83_v28  ;;  %v88_v36 = vrot.slane %v79_v29, %v87_v31  ;;  %v92_v42 = vrot.slane %v79_v29, %v91_v34  ;;  %p1177_p13 = por %p1176_p12, %p1175_p11 }
  0x3f   :  { %1049 = vmatpush3.bf16.msra.mxu1 %v1046_v16  ;;  %1045 = vmatpush1.bf16.msra.mxu0 %v1044_v15  ;;  %v271_v32 = vrot.slane %v930_v26, %v270_v27  ;;  %v278_v35 = vrot.slane %v264_v30, %v270_v27 }
  0x40   :  { %1051 = vmatprep.subr.bf16.mxu1 %v1050_v19  ;;  %p1178_p0 = pnand %p1177_p13, %p1171_p10 }
  0x41   :  { %v1295_v37 = vrot.slane %v271_v32, %v83_v28  ;;  %v279_v38 = vcombine.high %v271_v32, %v271_v32  ;;  %v1297_v43 = vrot.slane %v278_v35, %v83_v28  ;;  %v280_v45 = vcombine.high %v278_v35, %v278_v35 }
  0x42   :  { %926 = vmatmul.mubr.msk.f32.vlgmr.msra.gmra.mrb[0].mxu0 %vm96_vm0, %v65_v12 }
  0x43   :  { %1053 = vmatpush3.bf16.msra.mxu1 %v1050_v19  ;;  %173 = vmatprep.mubr.f32.mxu0 %v1205_v0  ;;  %v1300_v47 = vrot.slane %v279_v38, %v83_v28  ;;  %v1306_v56 = vrot.slane %v280_v45, %v83_v28 }
  0x46   :  { %993 = vmatmul.mubr.msk.f32.vlgmr.msra.gmra.mrb[0].mxu1 %vm96_vm0, %v66_v20  ;;  %927 = vmatmul.mubr.msk.f32.gmra.mrb[2].mxu0 %vm96_vm0, %v66_v20 }
 0x115   :  { %v169_v39 = vpop.f32.mrb[0].mxu0 }
 0x116   :  { %v170_v40 = vadd.f32 %v169_v39, %v84_v33  ;;  %v171_v41 = vpop.f32.mrb[1].mxu0 }
 0x117   :  { %v172_v44 = vadd.f32 %v171_v41, %v88_v36 }
 0x118   :  { %v301_v46 = vmul.f32 %v1295_v37, %v170_v40  ;;  %v302_v54 = vmul.f32 %v1297_v43, %v170_v40  ;;  %v303_v58 = vmul.f32 %v1300_v47, %v170_v40  ;;  %v304_v61 = vmul.f32 %v1306_v56, %v170_v40 }
 0x119   :  { %v994_v48 = vpop.f32.mrb[0].mxu1  ;;  %v175_v49 = vpop.f32.mrb[2].mxu0  ;;  %995 = vmatprep.subr.msk.mxu1 %vm96_vm0, %v172_v44 }
 0x11a   :  { %v246_v50 = vpop.f32.mrb[1].mxu1  ;;  %v176_v51 = vadd.f32 %v175_v49, %v84_v33  ;;  %v177_v52 = vpop.f32.mrb[3].mxu0  ;;  %996 = vmatpush3.xpose.msk.msra.mxu1 %vm96_vm0, %v172_v44  ;;  %997 = vmatprep.mubr.msk.f32.mxu1 %vm96_vm0, %v301_v46  ;;  %v252_v57 = vadd.f32 %v994_v48, %v92_v42 }
 0x11b   :  { %v247_v53 = vadd.f32 %v246_v50, %v92_v42  ;;  %v178_v55 = vadd.f32 %v177_v52, %v88_v36 }
 0x11c   :  { %v305_v59 = vmul.f32 %v1295_v37, %v176_v51  ;;  %v306_v60 = vmul.f32 %v1297_v43, %v176_v51  ;;  %v307_v62 = vmul.f32 %v1300_v47, %v176_v51  ;;  %v308_v63 = vmul.f32 %v1306_v56, %v176_v51 }
 0x11d   :  { %1011 = vmatprep.subr.mxu1 %v247_v53  ;;  %998 = vmatmul.mubr.msk.f32.vlgmr.msra.gmra.mrb[2].mxu1 %vm96_vm0, %v302_v54 }
 0x11e   :  { %1003 = vmatprep.subr.msk.mxu0 %vm96_vm0, %v178_v55  ;;  %1000 = vmatprep.mubr.msk.f32.mxu1 %vm96_vm0, %v303_v58 }
 0x11f   :  { %1004 = vmatpush3.xpose.msk.msra.mxu0 %vm96_vm0, %v178_v55  ;;  %1005 = vmatprep.mubr.msk.f32.mxu0 %vm96_vm0, %v305_v59 }
 0x120   :  { %1019 = vmatprep.subr.mxu0 %v252_v57  ;;  %1012 = vmatpush3.msra.mxu1 %v247_v53 }
 0x121   :  { %1001 = vmatmul.mubr.msk.f32.gmra.mrb[4].mxu1 %vm96_vm0, %v304_v61 }
 0x122   :  { %1006 = vmatmul.mubr.msk.f32.vlgmr.msra.gmra.mrb[4].mxu0 %vm96_vm0, %v306_v60 }
 0x123   :  { %1008 = vmatprep.mubr.msk.f32.mxu0 %vm96_vm0, %v307_v62  ;;  %1020 = vmatpush3.msra.mxu0 %v252_v57 }
 0x126   :  { %1009 = vmatmul.mubr.msk.f32.gmra.mrb[6].mxu0 %vm96_vm0, %v308_v63 }
 0x1f0   :  { %v999_v0 = vpop.f32.mrb[2].mxu1 }
 0x1f1   :  { %v390_v1 = vpop.f32.mrb[3].mxu1  ;;  %v513_v2 = vsel %vm509_vm1, %v999_v0, -inf }
 0x1f2   :  { %514 = vmax.xlane.f32.xlu0 %v513_v2  ;;  %v510_v8 = vsel %vm509_vm1, %v390_v1, -inf }
 0x1f4   :  { %v1002_v3 = vpop.f32.mrb[4].mxu1 }
 0x1f5   :  { %v1007_v4 = vpop.f32.mrb[4].mxu0  ;;  %v400_v5 = vpop.f32.mrb[5].mxu1  ;;  %v519_v13 = vsel %vm509_vm1, %v1002_v3, -inf }
 0x1f6   :  { %v490_v6 = vpop.f32.mrb[5].mxu0  ;;  %v525_v7 = vsel %vm509_vm1, %v1007_v4, -inf  ;;  %511 = vmax.xlane.f32.xlu0 %v510_v8  ;;  %v516_v12 = vsel %vm509_vm1, %v400_v5, -inf }
 0x1f7   :  { %526 = vmax.xlane.f32.xlu1 %v525_v7  ;;  %v522_v11 = vsel %vm509_vm1, %v490_v6, -inf }
 0x1f9   :  { %v1010_v9 = vpop.f32.mrb[6].mxu0 }
 0x1fa   :  { %v500_v10 = vpop.f32.mrb[7].mxu0  ;;  %517 = vmax.xlane.f32.xlu0 %v516_v12  ;;  %v531_v15 = vsel %vm509_vm1, %v1010_v9, -inf }
 0x1fb   :  { %523 = vmax.xlane.f32.xlu1 %v522_v11  ;;  %v528_v14 = vsel %vm509_vm1, %v500_v10, -inf }
 0x1fe   :  { %529 = vmax.xlane.f32.xlu0 %v528_v14 }
 0x1ff   :  { %520 = vmax.xlane.f32.xlu1 %v519_v13 }
 0x203   :  { %532 = vmax.xlane.f32.xlu1 %v531_v15 }
 0x27f   :  { %v515_v16 = vpop.xlane.xlu0 %514 }
 0x280   :  { %v535_v17 = vsub.f32 %v999_v0, %v515_v16 }
 0x282   :  { %v544_v18 = vmul.f32 1.442695, %v535_v17 }
 0x283   :  { %v512_v20 = vpop.xlane.xlu0 %511 }
 0x284   :  { %v527_v19 = vpop.xlane.xlu1 %526  ;;  %1072 = vpow2.f32 %v544_v18  ;;  %v534_v22 = vsub.f32 %v390_v1, %v512_v20  ;;  %v814_v20 = vld [vmem:[#allocation7] sm:$0xff] }
 0x285   :  { %v539_v21 = vsub.f32 %v1007_v4, %v527_v19 }
 0x286   :  { %v542_v24 = vmul.f32 1.442695, %v534_v22 }
 0x287   :  { %v552_v23 = vmul.f32 1.442695, %v539_v21  ;;  %v518_v26 = vpop.xlane.xlu0 %517  ;;  %v815_v21 = vld [vmem:[#allocation7 + $0x8] sm:$0xff] }
 0x288   :  { %v524_v25 = vpop.xlane.xlu1 %523  ;;  %v536_v28 = vsub.f32 %v400_v5, %v518_v26  ;;  %v1054_v22 = vpack.c.bf16 %v815_v21, %v814_v20 }
 0x289   :  { %1074 = vpow2.f32 %v552_v23  ;;  %v538_v27 = vsub.f32 %v490_v6, %v524_v25  ;;  %v816_v23 = vld [vmem:[#allocation7 + $0x10] sm:$0xff] }
 0x28a   :  { %1076 = vpow2.f32 %v542_v24  ;;  %v546_v30 = vmul.f32 1.442695, %v536_v28  ;;  %1055 = vmatprep.subr.bf16.mxu1 %v1054_v22  ;;  %v817_v24 = vld [vmem:[#allocation7 + $0x18] sm:$0xff] }
 0x28b   :  { %v550_v29 = vmul.f32 1.442695, %v538_v27  ;;  %v530_v32 = vpop.xlane.xlu0 %529  ;;  %v1058_v25 = vpack.c.bf16 %v817_v24, %v816_v23 }
 0x28c   :  { %v521_v31 = vpop.xlane.xlu1 %520  ;;  %v540_v34 = vsub.f32 %v500_v10, %v530_v32 }
 0x28d   :  { %1078 = vpow2.f32 %v550_v29  ;;  %v537_v33 = vsub.f32 %v1002_v3, %v521_v31 }
 0x28e   :  { %v1073_v35 = vpop.eup %1072  ;;  %1080 = vpow2.f32 %v546_v30  ;;  %v554_v38 = vmul.f32 1.442695, %v540_v34 }
 0x28f   :  { %v548_v36 = vmul.f32 1.442695, %v537_v33  ;;  %v561_v40 = vsel %vm509_vm1, %v1073_v35, 0.0 }
 0x290   :  { %v533_v39 = vpop.xlane.xlu1 %532  ;;  %562 = vadd.xlane.f32.xlu1 %v561_v40 }
 0x291   :  { %1082 = vpow2.f32 %v548_v36  ;;  %v541_v41 = vsub.f32 %v1010_v9, %v533_v39 }
 0x292   :  { %1084 = vpow2.f32 %v554_v38 }
 0x293   :  { %v1075_v42 = vpop.eup %1074  ;;  %v556_v44 = vmul.f32 1.442695, %v541_v41 }
 0x294   :  { %v1077_v45 = vpop.eup %1076  ;;  %v573_v46 = vsel %vm509_vm1, %v1075_v42, 0.0 }
 0x295   :  { %1086 = vpow2.f32 %v556_v44  ;;  %574 = vadd.xlane.f32.xlu1 %v573_v46  ;;  %v558_v48 = vsel %vm509_vm1, %v1077_v45, 0.0 }
 0x296   :  { %559 = vadd.xlane.f32.xlu0 %v558_v48 }
 0x297   :  { %v1079_v49 = vpop.eup %1078 }
 0x298   :  { %v570_v50 = vsel %vm509_vm1, %v1079_v49, 0.0  ;;  %v1081_v51 = vpop.eup %1080 }
 0x299   :  { %v564_v54 = vsel %vm509_vm1, %v1081_v51, 0.0 }
 0x29a   :  { %571 = vadd.xlane.f32.xlu0 %v570_v50 }
 0x29b   :  { %v1083_v52 = vpop.eup %1082 }
 0x29c   :  { %v567_v53 = vsel %vm509_vm1, %v1083_v52, 0.0  ;;  %v1085_v55 = vpop.eup %1084 }
 0x29d   :  { %568 = vadd.xlane.f32.xlu1 %v567_v53  ;;  %v576_v59 = vsel %vm509_vm1, %v1085_v55, 0.0 }
 0x29e   :  { %565 = vadd.xlane.f32.xlu0 %v564_v54 }
 0x29f   :  { %v1087_v57 = vpop.eup %1086 }
 0x2a0   :  { %v579_v58 = vsel %vm509_vm1, %v1087_v57, 0.0 }
 0x2a1   :  { %580 = vadd.xlane.f32.xlu1 %v579_v58  ;;  %v949_v58 = vld [vmem:[%s1389_s4] ss:$0 sm:$0xff] }
 0x2a2   :  { %577 = vadd.xlane.f32.xlu0 %v576_v59 }
 0x31d   :  { %v563_v60 = vpop.xlane.xlu1 %562 }
 0x31e   :  { %1088 = vrcp.f32 %v563_v60 }
 0x322   :  { %v575_v62 = vpop.xlane.xlu1 %574 }
 0x323   :  { %v560_v61 = vpop.xlane.xlu0 %559 }
 0x324   :  { %1090 = vrcp.f32 %v560_v61 }
 0x325   :  { %1092 = vrcp.f32 %v575_v62 }
 0x327   :  { %v572_v63 = vpop.xlane.xlu0 %571 }
 0x328   :  { %1094 = vrcp.f32 %v572_v63  ;;  %v1089_v2 = vpop.eup %1088 }
 0x329   :  { %v585_v7 = vmul.f32 %v1089_v2, %v1073_v35 }
 0x32a   :  { %v569_v0 = vpop.xlane.xlu1 %568 }
 0x32b   :  { %1096 = vrcp.f32 %v569_v0  ;;  %v566_v1 = vpop.xlane.xlu0 %565 }
 0x32c   :  { %1098 = vrcp.f32 %v566_v1 }
 0x32e   :  { %v1091_v3 = vpop.eup %1090  ;;  %v581_v4 = vpop.xlane.xlu1 %580 }
 0x32f   :  { %1100 = vrcp.f32 %v581_v4  ;;  %v578_v5 = vpop.xlane.xlu0 %577  ;;  %v583_v6 = vmul.f32 %v1091_v3, %v1077_v45  ;;  %v1093_v8 = vpop.eup %1092 }
 0x330   :  { %1102 = vrcp.f32 %v578_v5  ;;  %v593_v11 = vmul.f32 %v1093_v8, %v1075_v42 }
 0x331   :  { %1013 = vmatprep.mubr.msk.f32.mxu1 %vm509_vm1, %v583_v6 }
 0x332   :  { %v1095_v9 = vpop.eup %1094  ;;  %1014 = vmatmul.mubr.msk.f32.vlgmr.msra.gmra.mrb[6].mxu1 %vm509_vm1, %v585_v7 }
 0x333   :  { %v591_v10 = vmul.f32 %v1095_v9, %v1079_v49  ;;  %1057 = vmatpush3.bf16.msra.mxu1 %v1054_v22 }
 0x334   :  { %1059 = vmatprep.subr.bf16.mxu1 %v1058_v25 }
 0x335   :  { %v1097_v12 = vpop.eup %1096  ;;  %1021 = vmatprep.mubr.msk.f32.mxu0 %vm509_vm1, %v591_v10 }
 0x336   :  { %v1099_v13 = vpop.eup %1098  ;;  %1022 = vmatmul.mubr.msk.f32.vlgmr.msra.gmra.mrb[8].mxu0 %vm509_vm1, %v593_v11  ;;  %v589_v14 = vmul.f32 %v1097_v12, %v1083_v52 }
 0x337   :  { %v587_v15 = vmul.f32 %v1099_v13, %v1081_v51  ;;  %1061 = vmatpush3.bf16.msra.mxu1 %v1058_v25 }
 0x339   :  { %v1101_v16 = vpop.eup %1100  ;;  %1016 = vmatprep.mubr.msk.f32.mxu1 %vm509_vm1, %v587_v15 }
 0x33a   :  { %v1103_v17 = vpop.eup %1102  ;;  %1017 = vmatmul.mubr.msk.f32.gmra.mrb[8].mxu1 %vm509_vm1, %v589_v14  ;;  %v597_v18 = vmul.f32 %v1101_v16, %v1087_v57 }
 0x33b   :  { %v595_v19 = vmul.f32 %v1103_v17, %v1085_v55 }
 0x33d   :  { %1024 = vmatprep.mubr.msk.f32.mxu0 %vm509_vm1, %v595_v19 }
 0x33e   :  { %1025 = vmatmul.mubr.msk.f32.gmra.mrb[10].mxu0 %vm509_vm1, %v597_v18 }
 0x405   :  { %v1015_v26 = vpop.f32.mrb[6].mxu1 }
 0x406   :  { %v793_v27 = vmul.f32 %v1015_v26, %v1297_v43  ;;  %v676_v28 = vpop.f32.mrb[7].mxu1 }
 0x407   :  { %v792_v29 = vmul.f32 %v676_v28, %v1295_v37 }
 0x408   :  { %v801_v30 = vsel %vm96_vm0, %v793_v27, 0.0 }
 0x409   :  { %v800_v31 = vsel %vm96_vm0, %v792_v29, 0.0  ;;  %v1023_v32 = vpop.f32.mrb[8].mxu0 }
 0x40a   :  { %v802_v33 = vadd.f32 %v801_v30, %v800_v31  ;;  %v797_v34 = vmul.f32 %v1023_v32, %v1297_v43  ;;  %v773_v35 = vpop.f32.mrb[9].mxu0 }
 0x40b   :  { %v796_v36 = vmul.f32 %v773_v35, %v1295_v37 }
 0x40c   :  { %v808_v38 = vsel %vm96_vm0, %v797_v34, 0.0 }
 0x40d   :  { %v807_v39 = vsel %vm96_vm0, %v796_v36, 0.0  ;;  %v1018_v40 = vpop.f32.mrb[8].mxu1 }
 0x40e   :  { %v809_v41 = vadd.f32 %v808_v38, %v807_v39  ;;  %v686_v42 = vpop.f32.mrb[9].mxu1  ;;  %v795_v44 = vmul.f32 %v1018_v40, %v1306_v56 }
 0x40f   :  { %v794_v45 = vmul.f32 %v686_v42, %v1300_v47 }
 0x410   :  { %v805_v43 = vsel %vm96_vm0, %v795_v44, 0.0 }
 0x411   :  { %v803_v46 = vsel %vm96_vm0, %v794_v45, 0.0  ;;  %v1026_v48 = vpop.f32.mrb[10].mxu0 }
 0x412   :  { %v804_v49 = vadd.f32 %v803_v46, %v802_v33  ;;  %v783_v50 = vpop.f32.mrb[11].mxu0  ;;  %v799_v37 = vmul.f32 %v1026_v48, %v1306_v56 }
 0x413   :  { %v798_v51 = vmul.f32 %v783_v50, %v1300_v47 }
 0x414   :  { %v806_v52 = vadd.f32 %v805_v43, %v804_v49  ;;  %v812_v55 = vsel %vm96_vm0, %v799_v37, 0.0 }
 0x415   :  { %v810_v53 = vsel %vm96_vm0, %v798_v51, 0.0 }
 0x416   :  { %v811_v54 = vadd.f32 %v810_v53, %v809_v41  ;;  %1035 = vmatprep.mubr.msk.f32.mxu1 %vm96_vm0, %v806_v52 }
 0x418   :  { %v813_v57 = vadd.f32 %v812_v55, %v811_v54 }
 0x41a   :  { %1036 = vmatmul.mubr.msk.f32.vlgmr.msra.gmra.mrb[10].mxu1 %vm96_vm0, %v813_v57 }
 0x4ed   :  { %v1037_v56 = vpop.f32.mrb[10].mxu1 }
 0x4ee   :  { %v903_v59 = vadd.f32 %v1037_v56, %v949_v58  ;;  %v897_v47 = vpop.f32.mrb[11].mxu1 }
 0x4ef   :  { %v898_v60 = vadd.f32 %v949_v58, %v897_v47 }
 0x4f0   :  { %907 = vst.msk [vmem:[#allocation8 + $0x8] sm:$0xff] %vm96_vm0, %v903_v59 }
 0x4f1   :  { %906 = vst.msk [vmem:[#allocation8] sm:$0xff] %vm96_vm0, %v898_v60 }
 0x4f2   :  { %1181 = shalt.err (!%p1178_p0)
}
 0x4f3   :  { %s1182_s18 = scalar_lea.hbm %s1391_s6, 256 }
 0x4f4   :  { %p1183_p1 = scmp.ne.s32.totalorder %s1391_s6, %s1182_s18  ;;  %p1186_p2 = scmp.lt.u32.totalorder %s1182_s18, %s1391_s6 }
 0x4f6   :  { %p1188_p3 = pnand %p1186_p2, %p1183_p1 }
 0x4f8   :  { %1191 = shalt.err (!%p1188_p3)
}
 0x4f9   :  { %919 = dma.vmem_to_hbm [thread:$0]  %s914_s15, 256, %s1391_s6, [#allocation4], %s1202_s1, %s1202_s1, %s1203_s21  }
 0x4fa   :  { %1196 = dma.done.wait [#allocation4], 256  }
 0x4fb   :  { %1197 = vsyncadd [#allocation4], 4294967040 }
 0x4fc   :  { %923 = vsyncpa [#allocation3], 1 }
 0x4fd   :  { %924 = vsyncpa [#allocation6], 1 }
 0x4fe   :  { %925 = vsyncpa [#allocation4], 1 }

</bundles_post_ra>
